<compile_context>
chip_gen: v7x
topology: tpu7x:2x2x1
jax: 0.10.0
libtpu: 0.0.40
codegen_flags: <defaults>
</compile_context>

<pallas_src>
import functools
import numpy as np
import jax
import jax.numpy as jnp
from jax.experimental import pallas as pl
from jax.experimental.pallas import tpu as pltpu


def _pe_dropout_kernel(x_ref, pe_ref, seed_ref, o_ref, *,
                       keep_prob, apply_dropout, rows_total):
    """x_ref/o_ref: (ts, C) tile of one batch element; pe_ref: (ts, C) float32."""
    # PE add in the input dtype (bf16-native on v6e/v7x, f32 on f32 inputs).
    y = x_ref[...] + pe_ref[...].astype(x_ref.dtype)

    if apply_dropout:
        ts, cc = y.shape
        s = pl.program_id(0).astype(jnp.uint32)     # seq-tile index (outer axis)
        b = pl.program_id(1).astype(jnp.uint32)     # batch index (inner axis)

        row = jax.lax.broadcasted_iota(jnp.int32, (ts, cc), 0).astype(jnp.uint32)
        col = jax.lax.broadcasted_iota(jnp.int32, (ts, cc), 1).astype(jnp.uint32)

        # Unique per-element counter: global flattened index of the element.
        base = (b * jnp.uint32((rows_total * cc) & 0xFFFFFFFF)
                + s * jnp.uint32((ts * cc) & 0xFFFFFFFF))
        u = base + row * jnp.uint32(cc) + col
        # Mix the seed in, then lowbias32 hash -> ~uniform 32-bit stream.
        u = u + seed_ref[0].astype(jnp.uint32) * jnp.uint32(0x9E3779B1)
        u = u ^ (u >> 16)
        u = u * jnp.uint32(0x7FEB352D)
        u = u ^ (u >> 15)
        u = u * jnp.uint32(0x846CA68B)
        u = u ^ (u >> 16)

        thr = jnp.uint32(min(int(round(keep_prob * (2.0 ** 32))), 2 ** 32 - 1))
        keep = u < thr
        inv_keep = (1.0 / keep_prob) if keep_prob > 0.0 else 0.0
        scale = jnp.asarray(inv_keep, dtype=y.dtype)
        y = jnp.where(keep, y * scale, jnp.zeros_like(y))

    o_ref[...] = y.astype(o_ref.dtype)


def _pick_rows(rows, cols, itemsize):
    """Rows per block: <= ~2 MiB per block, multiple of the sublane pack."""
    sub = {4: 8, 2: 16, 1: 32}.get(int(itemsize), 8)
    if rows <= sub:
        return rows
    bytes_cap = 2 * 1024 * 1024
    max_rows = max(sub, (bytes_cap // max(cols * itemsize, 1)) // sub * sub)
    return rows if max_rows >= rows else max_rows


def positional_encoding_forward(x, pe_table, *, dropout_p, training, seed=0):
    """x: (B, S, H); pe_table: (max_len, H) float32. Returns (B, S, H) in x.dtype."""
    B, S, H = x.shape
    orig_shape = x.shape

    if H % 128 == 0:
        # Already lane-dense: keep (B, S, H) and pass the FULL table; the PE
        # index_map selects rows, so no per-call slice/copy of P.
        rows, cols = S, H
        xr = x
        pe = pe_table
    elif (S * H) % 128 == 0:
        # Sub-lane-width H: flatten to a lane-dense (B, S*H/128, 128) view so
        # stores are unmasked full-lane vst; reshape back afterwards.
        rows, cols = (S * H) // 128, 128
        xr = x.reshape(B, rows, cols)
        pe = pe_table[:S, :].reshape(rows, cols)
    else:
        # TODO(synk): ragged S*H not divisible by 128 falls back to masked
        # partial stores (correct, just slower).
        rows, cols = S, H
        xr = x
        pe = pe_table

    pe = pe.astype(jnp.float32)
    seed_arr = jnp.asarray([seed], dtype=jnp.int32)

    apply_dropout = bool(training) and float(dropout_p) > 0.0
    keep_prob = 1.0 - float(dropout_p)

    ts = _pick_rows(rows, cols, xr.dtype.itemsize)
    # Seq tiles OUTER, batch INNER: PE block index is constant across the
    # inner batch loop -> Pallas skips the redundant DMA (PE stays resident).
    grid = (pl.cdiv(rows, ts), B)

    kernel = functools.partial(
        _pe_dropout_kernel,
        keep_prob=keep_prob,
        apply_dropout=apply_dropout,
        rows_total=rows,
    )

    y = pl.pallas_call(
        kernel,
        out_shape=jax.ShapeDtypeStruct((B, rows, cols), x.dtype),
        grid=grid,
        in_specs=[
            pl.BlockSpec((None, ts, cols), lambda s, b: (b, s, 0)),   # X tile
            pl.BlockSpec((ts, cols), lambda s, b: (s, 0)),            # PE (resident over b)
            pl.BlockSpec(memory_space=pltpu.MemorySpace.SMEM),        # seed scalar
        ],
        out_specs=pl.BlockSpec((None, ts, cols), lambda s, b: (b, s, 0)),
        compiler_params=pltpu.CompilerParams(
            dimension_semantics=("parallel", "parallel"),
            vmem_limit_bytes=48 * 1024 * 1024,
        ),
    )(xr, pe, seed_arr)

    return y.reshape(orig_shape)


class PositionalEncodingPallas:
    """Mirror of needle `PositionalEncoding` (sinusoidal PE + Dropout)."""

    def __init__(self, num_hiddens, dropout, max_len=1000):
        self.training = True
        self.p = float(dropout)
        pos = np.arange(max_len, dtype=np.float64).reshape(-1, 1)
        inv = np.power(10000.0,
                       np.arange(0, num_hiddens, 2, dtype=np.float64) / num_hiddens)
        ang = pos / inv
        P = np.zeros((max_len, num_hiddens), dtype=np.float64)
        P[:, 0::2] = np.sin(ang)
        P[:, 1::2] = np.cos(ang)
        self.P = jnp.asarray(P, dtype=jnp.float32)        # (max_len, H)

    def parameters(self):
        return []  # P is a constant buffer, not a Parameter (matches the spec)

    def eval(self):
        self.training = False

    def train(self):
        self.training = True

    def __call__(self, X, seed=0):
        return self.forward(X, seed=seed)

    def forward(self, X, seed=0):
        return positional_encoding_forward(
            X, self.P, dropout_p=self.p, training=self.training, seed=seed)


if __name__ == "__main__":
    key = jax.random.PRNGKey(0)
    B, S, H = 2, 8, 32
    x = jax.random.normal(key, (B, S, H), dtype=jnp.float32)

    mod = PositionalEncodingPallas(num_hiddens=H, dropout=0.5, max_len=1000)

    # Eval mode: deterministic Y = X + P[:S] — compare against pure-JAX reference.
    mod.eval()
    y_eval = jax.block_until_ready(mod(x))
    ref = x + mod.P[:S, :][None, :, :]
    assert y_eval.shape == x.shape and y_eval.dtype == x.dtype
    assert bool(jnp.allclose(y_eval, ref, atol=1e-5, rtol=1e-5))

    # Train mode: every output entry must be 0 (dropped) or (X+P)/(1-p) (kept).
    mod.train()
    y_train = jax.block_until_ready(mod(x, seed=1234))
    scaled = ref / 0.5
    ok = (jnp.isclose(y_train, 0.0, atol=1e-6)
          | jnp.isclose(y_train, scaled, atol=1e-4, rtol=1e-4))
    assert bool(jnp.all(ok))
    zero_frac = float(jnp.mean(jnp.isclose(y_train, 0.0, atol=1e-6)))
    assert 0.0 < zero_frac < 1.0  # dropout dropped something and kept something

    # Lane-dense (H % 128 == 0) path with bf16 inputs, eval mode.
    B2, S2, H2 = 2, 16, 128
    x2 = jax.random.normal(jax.random.PRNGKey(1), (B2, S2, H2), dtype=jnp.bfloat16)
    mod2 = PositionalEncodingPallas(num_hiddens=H2, dropout=0.1, max_len=64)
    mod2.eval()
    y2 = jax.block_until_ready(mod2(x2))
    ref2 = x2.astype(jnp.float32) + mod2.P[:S2, :][None, :, :]
    assert y2.shape == x2.shape and y2.dtype == x2.dtype
    assert bool(jnp.allclose(y2.astype(jnp.float32), ref2, atol=3e-2, rtol=3e-2))

    print("KERNEL_OK")
</pallas_src>

<mosaic_0001>
module attributes {stable_mosaic.version = 11 : i64} {
  func.func @_pe_dropout_kernel(%arg0: i32, %arg1: i32, %arg2: memref<1x2x128xf32, #tpu.memory_space<vmem>>, %arg3: memref<2x128xf32, #tpu.memory_space<vmem>>, %arg4: memref<1xi32, #tpu.memory_space<smem>>, %arg5: memref<1x2x128xf32, #tpu.memory_space<vmem>>) attributes {dimension_semantics = [#tpu.dimension_semantics<parallel>, #tpu.dimension_semantics<parallel>], iteration_bounds = array<i64: 1, 2>, scalar_prefetch = 0 : i64, scratch_operands = 0 : i64, tpu.core_type = #tpu.core_type<tc>, window_params = [{transform_indices = @transform_0, window_bounds = array<i64: 1, 2, 128>}, {transform_indices = @transform_1, window_bounds = array<i64: 2, 128>}, {transform_indices = @transform_2, window_bounds = array<i64: 1>}, {transform_indices = @transform_3, window_bounds = array<i64: 1, 2, 128>}]} {
    %c0 = arith.constant 0 : index
    %c0_0 = arith.constant 0 : index
    %c0_1 = arith.constant 0 : index
    %0 = vector.load %arg2[%c0, %c0_0, %c0_1] : memref<1x2x128xf32, #tpu.memory_space<vmem>>, vector<1x2x128xf32>
    %1 = vector.shape_cast %0 : vector<1x2x128xf32> to vector<2x128xf32>
    %c0_2 = arith.constant 0 : index
    %c0_3 = arith.constant 0 : index
    %2 = vector.load %arg3[%c0_2, %c0_3] : memref<2x128xf32, #tpu.memory_space<vmem>>, vector<2x128xf32>
    %3 = arith.addf %1, %2 : vector<2x128xf32>
    %c0_4 = arith.constant 0 : index
    %c0_5 = arith.constant 0 : index
    %c0_6 = arith.constant 0 : index
    %4 = vector.load %arg5[%c0_4, %c0_5, %c0_6] : memref<1x2x128xf32, #tpu.memory_space<vmem>>, vector<1x2x128xf32>
    %5 = vector.shape_cast %4 : vector<1x2x128xf32> to vector<2x128xf32>
    %6 = vector.shape_cast %3 : vector<2x128xf32> to vector<1x2x128xf32>
    tpu.vector_store %arg5[%c0_4, %c0_5, %c0_6], %6 {strides = array<i32>} : memref<1x2x128xf32, #tpu.memory_space<vmem>>, vector<1x2x128xf32>,
    return
  }
  func.func @transform_0(%arg0: i32, %arg1: i32) -> (i32, i32, i32) {
    %c0_i32 = arith.constant 0 : i32
    %c0_i32_0 = arith.constant 0 : i32
    return %arg1, %arg0, %c0_i32 : i32, i32, i32
  }
  func.func @transform_1(%arg0: i32, %arg1: i32) -> (i32, i32) {
    %c0_i32 = arith.constant 0 : i32
    %c0_i32_0 = arith.constant 0 : i32
    return %arg0, %c0_i32 : i32, i32
  }
  func.func @transform_2(%arg0: i32, %arg1: i32) -> i32 {
    %c0_i32 = arith.constant 0 : i32
    %c0_i32_0 = arith.constant 0 : i32
    return %c0_i32 : i32
  }
  func.func @transform_3(%arg0: i32, %arg1: i32) -> (i32, i32, i32) {
    %c0_i32 = arith.constant 0 : i32
    %c0_i32_0 = arith.constant 0 : i32
    return %arg1, %arg0, %c0_i32 : i32, i32, i32
  }
}

</mosaic_0001>

<bundles_post_ra>
// kernel: tpu_custom_call.1
= control target key start
LH: loop header
LB: loop body
LE: loop exit
PB: predicated region body
PF: predicated region fallthrough
CT: control target
= control target key end

     0   :  { %9 = vsyncpa [#allocation4], 0  ;;  %s722_s0 = inlined_call_operand.hbm [shape: f32[2,2,128], index: 0, kind: input, shape index: {}]   ;;  %s723_s1 = inlined_call_operand.vmem [shape: f32[2,128], index: 1, kind: input, shape index: {}]   ;;  %s724_s2 = inlined_call_operand.<no memory space> [shape: s32[1], index: 2, kind: input, shape index: {}]   ;;  %s725_s3 = inlined_call_operand.hbm [shape: f32[2,2,128], index: 3, kind: output, shape index: {}]  }
   0x1   :  { %11 = vsyncpa [#allocation4 + $0x1], 0 }
   0x2   :  { %12 = vsyncpa [#allocation5], 0 }
   0x3   :  { %14 = vsyncpa [#allocation5 + $0x1], 0  ;;  %s547_s12 = smov 0   ;;  %s549_s13 = smov 0  }
   0x4   :  { %s551_s14 = smov 0   ;;  %s553_s15 = smov 0  }
   0x5   :  { %s555_s16 = smov 0   ;;  %s557_s17 = smov 0  }
   0x6 LB: > { %s335_s2 = sadd.s32 4294967295, %s523_s17   ;;  %s336_s18 = sadd.s32 4294967294, %s523_s17   ;;  %s523_s17 = sphi %s557_s17, %s20_s17   ;;  %s519_s16 = sphi %s555_s16, %s741_s16   ;;  %s515_s15 = sphi %s553_s15, %s740_s15   ;;  %s511_s14 = sphi %s551_s14, %s739_s14   ;;  %s507_s13 = sphi %s549_s13, %s738_s13   ;;  %s503_s12 = sphi %s547_s12, %s737_s12  }
   0x7   : > { %s29_s19 = sadd.s32 1, %s519_s16  ;;  %s41_s20 = sadd.s32 1, %s511_s14 }
   0x8   : > { %p30_p0 = scmp.ge.s32.totalorder %s29_s19, 2  ;;  %p48_p1 = scmp.ne.s32.totalorder %s511_s14, %s507_s13 }
   0x9   : > { %p49_p2 = scmp.eq.s32.totalorder %s523_s17, 0  ;;  %p54_p3 = scmp.ne.s32.totalorder %s507_s13, %s503_s12 }
   0xa   : > { %s743_s19 = smov (%p30_p0, %s29_s19), 0  ;;  %p55_p5 = scmp.eq.s32.totalorder %s335_s2, 0 }
   0xb   : > { %p588_p4 = por %p49_p2, %p48_p1  ;;  %s36_s22 = ssub.s32 %s519_s16, %s743_s19 }
   0xc   : > { %p127_p6 = scmp.eq.s32.totalorder %s335_s2, 1  ;;  %p39_p7 = scmp.eq.s32.totalorder %s36_s22, 0 }
   0xd   : > { %p594_p8 = por %p55_p5, %p54_p3  ;;  %p133_p10 = scmp.eq.s32.totalorder %s336_s18, 1 }
   0xe   : > { %p598_p9 = por %p127_p6, %p48_p1  ;;  %p361_p13 = scmp.lt.s32.totalorder %s523_s17, 2 }
   0xf   : > { %s603_s25 = scalar_select %p39_p7, %s511_s14, %s41_s20  }
  0x10   : > { %s729_s24 = scalar_select %p598_p9, 1, 0 }
  0x11   : > { %p605_p11 = por %p133_p10, %p54_p3  ;;  %s163_s27 = sand.u32 1, %s511_s14  }
  0x12   : > { %s340_s28 = sshll.u32 %s163_s27, 1  ;;  %s341_s29 = sshll.u32 %s519_s16, 5 }
  0x13   : > { %s730_s26 = scalar_select %p605_p11, 1, 0 }
  0x14   : > { %s616_s5 = scalar_lea.hbm %s722_s0, %s341_s29  ;;  %s167_s6 = scalar_lea.vmem [#allocation3], %s340_s28 }
  0x15   : > { %s175_s7 = sshll.u32 %s167_s6, 4  ;;  %p622_p0 = pnand %p361_p13, %p588_p4  ;;  %s618_s7 = int_to_ptr.vmem [resolvable:$true] %s175_s7 }
  0x16   : > { %s164_s9 = scalar_lea.sflag [#allocation4], %s163_s27  ;;  %s411_s10 = scalar_lea.hbm %s616_s5, 32 }
  0x17   : > { %p412_p3 = scmp.ne.s32.totalorder %s616_s5, %s411_s10  ;;  %p413_p5 = pneg %p622_p0 }
  0x18   : > { %s416_s18 = scalar_lea.hbm %s722_s0, 64  ;;  %p417_p4 = scmp.lt.u32.totalorder %s616_s5, %s722_s0 }
  0x19   : > { %p414_p6 = pnand %p413_p5, %p412_p3  ;;  %p418_p10 = scmp.lt.u32.totalorder %s416_s18, %s411_s10 }
  0x1a   : > { %p420_p12 = scmp.lt.u32.totalorder %s411_s10, %s616_s5 }
  0x1b   : > { %p415_p7 = pneg %p414_p6  ;;  %p419_p13 = por %p418_p10, %p417_p4 }
  0x1d   : > { %p421_p1 = por %p420_p12, %p419_p13 }
  0x1f   : > { %p422_p2 = pnand %p421_p1, %p415_p7 }
  0x21   : > { %425 = shalt.err (!%p422_p2)
}
  0x22   : > { %s426_s22 = scalar_lea.vmem %s618_s7, 32  ;;  %s525_s27 = smov [#allocation3]  }
  0x23   : > { %p427_p3 = scmp.ne.s32.totalorder %s618_s7, %s426_s22  ;;  %s431_s28 = sshll.u32 %s525_s27, 4  ;;  %s432_s28 = int_to_ptr.vmem [resolvable:$false] %s431_s28 }
  0x24   : > { %s433_s29 = scalar_lea.vmem %s432_s28, 64  ;;  %p434_p9 = scmp.lt.s32.totalorder %s618_s7, %s432_s28 }
  0x25   : > { %p429_p6 = pnand %p427_p3, %p413_p5  ;;  %p435_p4 = scmp.lt.s32.totalorder %s433_s29, %s426_s22 }
  0x27   : > { %p430_p11 = pneg %p429_p6  ;;  %p436_p10 = por %p435_p4, %p434_p9 }
  0x29   : > { %p437_p12 = pnand %p436_p10, %p430_p11 }
  0x2b   : > { %440 = shalt.err (!%p437_p12)
}
  0x2c   : > { %356 = dma.hbm_to_vmem [thread:$0]  (!%p622_p0), %s616_s5, 32, %s618_s7, %s164_s9  }
  0x2d   : > { %p732_p1 = scmp.lt.s32.totalorder %s523_s17, 3  ;;  %p733_p2 = scmp.ge.s32.totalorder %s523_s17, 1 }
  0x2f   : > { %p181_p5 = pnand %p733_p2, %p732_p1 }
  0x30   : > { %s658_s30 = sand.u32 (!%p181_p5), 1, %s507_s13  }
  0x31   : > { %184 = sbr.rel (%p181_p5) target bundleno = 83 (0x53), region = 32  ;;  %s343_s4 = sshll.u32 (!%p181_p5), %s658_s30, 1 }
  0x32   : > { %s187_s6 = scalar_lea.sflag (!%p181_p5), [#allocation4], %s658_s30  ;;  %s190_s10 = scalar_lea.vmem (!%p181_p5), [#allocation3], %s343_s4 }
  0x38   : > { %494 = dma.done.wait (%p594_p8), %s187_s6, 32  }
  0x39   : > { %496 = vsyncadd (%p594_p8), %s187_s6, 4294967264  ;;  %s216_s5 = scalar_lea.vmem [#allocation6], %s343_s4  ;;  %s346_s8 = sshll.u32 %s515_s15, 5  ;;  %v221_v0 = vld [vmem:[%s190_s10] sm:$0x3] }
  0x3a   : > { %s240_s7 = sshll.u32 %s216_s5, 4  ;;  %v222_v1 = vld [vmem:[%s723_s1] sm:$0x3]  ;;  %s675_s23 = scalar_lea.hbm %s725_s3, %s346_s8  ;;  %s670_s7 = int_to_ptr.vmem [resolvable:$true] %s240_s7 }
  0x3b   : > { %v223_v2 = vadd.f32 %v222_v1, %v221_v0  ;;  %s226_s20 = scalar_lea.sflag [#allocation5], %s658_s30  ;;  %s441_s21 = scalar_lea.vmem %s670_s7, 32 }
  0x3c   : > { %p442_p8 = scmp.ne.s32.totalorder %s670_s7, %s441_s21  ;;  %p734_p9 = scmp.ne.s32.totalorder %s729_s24, 0 }
  0x3d   : > { %224 = vst [vmem:[%s216_s5] sm:$0x3] %v223_v2  ;;  %s526_s15 = smov [#allocation6]  }
  0x3e   : > { %p443_p11 = pnand %p442_p8, %p734_p9  ;;  %s445_s22 = sshll.u32 %s526_s15, 4  ;;  %s446_s22 = int_to_ptr.vmem [resolvable:$false] %s445_s22 }
  0x3f   : > { %s447_s27 = scalar_lea.vmem %s446_s22, 64  ;;  %p448_p7 = scmp.lt.s32.totalorder %s670_s7, %s446_s22 }
  0x40   : > { %p444_p0 = pneg %p443_p11  ;;  %p449_p13 = scmp.lt.s32.totalorder %s447_s27, %s441_s21 }
  0x42   : > { %p450_p3 = por %p449_p13, %p448_p7 }
  0x44   : > { %p451_p6 = pnand %p450_p3, %p444_p0 }
  0x46   : > { %454 = shalt.err (!%p451_p6)
}
  0x47   : > { %s455_s28 = scalar_lea.hbm %s675_s23, 32  ;;  %s459_s4 = scalar_lea.hbm %s725_s3, 64 }
  0x48   : > { %p456_p4 = scmp.ne.s32.totalorder %s675_s23, %s455_s28  ;;  %p460_p1 = scmp.lt.u32.totalorder %s675_s23, %s725_s3 }
  0x49   : > { %p461_p2 = scmp.lt.u32.totalorder %s459_s4, %s455_s28  ;;  %p463_p8 = scmp.lt.u32.totalorder %s455_s28, %s675_s23 }
  0x4a   : > { %p457_p10 = pnand %p456_p4, %p734_p9 }
  0x4b   : > { %p462_p5 = por %p461_p2, %p460_p1 }
  0x4c   : > { %p458_p12 = pneg %p457_p10 }
  0x4d   : > { %p464_p11 = por %p463_p8, %p462_p5 }
  0x4f   : > { %p465_p0 = pnand %p464_p11, %p458_p12 }
  0x51   : > { %468 = shalt.err (!%p465_p0)
}
  0x52   : > { %351 = dma.vmem_to_hbm [thread:$0]  (%p734_p9), %s670_s7, 32, %s675_s23, %s226_s20  }
  0x53 PF: > { %s252_s5 = sand.u32 1, %s503_s12   ;;  %p735_p7 = scmp.ne.s32.totalorder %s730_s26, 0 }
  0x54   : > { %p736_p13 = scmp.ge.s32.totalorder %s523_s17, 2  ;;  %s253_s8 = scalar_lea.sflag [#allocation5], %s252_s5 }
  0x56   : > { %p358_p3 = pnand %p736_p13, %p735_p7 }
  0x58   : > { %498 = dma.done.wait (!%p358_p3), %s253_s8, 32  }
  0x59   : > { %500 = vsyncadd (!%p358_p3), %s253_s8, 4294967264  ;;  %s20_s17 = sadd.s32 1, %s523_s17   ;;  %s737_s12 = smov %s507_s13 }
  0x5a   : > { %p17_p6 = scmp.ge.s32.totalorder %s20_s17, 4   ;;  %s738_s13 = smov %s511_s14 }
  0x5b   : > { %s739_s14 = smov %s603_s25  ;;  %s740_s15 = smov %s519_s16 }
  0x5c   : > { %s741_s16 = smov %s743_s19  ;;  %19 = sbr.rel (!%p17_p6) target bundleno = 6 (0x6), region = 80 }
  0x63   :  { %258 = vsyncpa [#allocation4], 1 }
  0x64   :  { %260 = vsyncpa [#allocation4 + $0x1], 1 }
  0x65   :  { %261 = vsyncpa [#allocation5], 1 }
  0x66   :  { %263 = vsyncpa [#allocation5 + $0x1], 1 }

</bundles_post_ra>
